<compile_context>
chip_gen: v7x
topology: tpu7x:2x2x1
jax: 0.10.0
libtpu: 0.0.40
codegen_flags: <defaults>
</compile_context>

<pallas_src>
import jax
import jax.numpy as jnp
from jax.experimental import pallas as pl
from jax.experimental.pallas import tpu as pltpu


def _tanh_kernel(x_ref, o_ref):
    # Elementwise tanh on the whole VMEM tile (EUP transcendental).
    o_ref[...] = jnp.tanh(x_ref[...])
    # NOTE: the torch.cat([x,x,x],1) -> relu -> view(-1,1)[0] chain in the
    # reference module is dead code; it never contributes to the return value.


def _sublane_multiple(dtype) -> int:
    """Second-to-last-dim tiling multiple for the dtype's packing."""
    itemsize = jnp.dtype(dtype).itemsize
    assert itemsize in (1, 2, 4), f"unsupported TPU dtype itemsize {itemsize}"
    if itemsize == 4:
        return 8      # f32 / i32
    if itemsize == 2:
        return 16     # bf16 / f16
    return 32         # i8 / fp8


_SMALL_INPUT_BYTES = 256 * 1024     # below this, jnp.tanh wins on launch overhead
_MAX_BLOCK_BYTES = 2 * 1024 * 1024  # 2 MiB blocks: fit v5e's 16 MiB scoped VMEM,
                                    # ~85% of HBM roofline per measured curve


def _row_axis_semantics(num_blocks: int):
    """Pick grid-axis semantics.

    CORE_PARALLEL only changes codegen on multi-TensorCore chips (v7x), where
    splitting the stream across both cores' DMA engines matters for a
    DMA-bound kernel.  Plain PARALLEL is codegen-neutral but always safe.
    """
    if num_blocks < 2:
        return pltpu.PARALLEL
    try:
        kind = jax.devices()[0].device_kind.lower()
    except Exception:
        return pltpu.PARALLEL
    if "v7" in kind or "7x" in kind:
        return pltpu.CORE_PARALLEL
    return pltpu.PARALLEL


def _tanh_pallas_2d(x2: jax.Array, tm: int, semantics, alias: bool) -> jax.Array:
    rows, lane = x2.shape
    itemsize = jnp.dtype(x2.dtype).itemsize
    grid = (pl.cdiv(rows, tm),)
    extra = {"input_output_aliases": {0: 0}} if alias else {}
    return pl.pallas_call(
        _tanh_kernel,
        out_shape=jax.ShapeDtypeStruct((rows, lane), x2.dtype),
        grid_spec=pltpu.PrefetchScalarGridSpec(
            num_scalar_prefetch=0,
            grid=grid,
            in_specs=[pl.BlockSpec((tm, lane), lambda i: (i, 0))],
            out_specs=pl.BlockSpec((tm, lane), lambda i: (i, 0)),
        ),
        compiler_params=pltpu.CompilerParams(
            dimension_semantics=(semantics,),
        ),
        cost_estimate=pl.CostEstimate(
            flops=0,
            transcendentals=rows * lane,
            bytes_accessed=2 * rows * lane * itemsize,
        ),
        **extra,
    )(x2)


def model_forward(x: jax.Array, *, force_pallas: bool = False,
                  donate_input: bool = False) -> jax.Array:
    """Equivalent of Model.forward: returns tanh(x)."""
    n_total = int(x.size)
    itemsize = jnp.dtype(x.dtype).itemsize

    if n_total == 0:
        return jnp.tanh(x)
    if not force_pallas and n_total * itemsize < _SMALL_INPUT_BYTES:
        # Tiny tensors are overhead-dominated in a custom call; XLA's fused
        # tanh is already at roofline and can fuse with producers/consumers.
        return jnp.tanh(x)

    sub = _sublane_multiple(x.dtype)

    # ---- Layout plumbing (avoid extra HBM passes wherever possible) ----
    padded = False
    if (
        x.ndim >= 2
        and x.shape[-1] % 128 == 0
        and x.shape[-1] > 0
        and sub * x.shape[-1] * itemsize <= _MAX_BLOCK_BYTES
    ):
        # Zero-copy path: trailing dim is already lane-dense. No pad, no slice.
        lane = x.shape[-1]
        rows = n_total // lane
        x2 = x.reshape(rows, lane)
    else:
        # Flatten to a lane-dense (rows, lane) layout; pad only the flat tail
        # up to a lane multiple.  Rows are NOT sublane-rounded: Pallas masks
        # the partial final row block (block sublane dim is a `sub` multiple).
        lane = 1024 if n_total * itemsize >= (1 << 20) else 128
        rows = pl.cdiv(n_total, lane)
        padded_total = rows * lane
        flat = x.reshape(-1)
        padded = padded_total != n_total
        if padded:
            flat = jnp.pad(flat, (0, padded_total - n_total))
        x2 = flat.reshape(rows, lane)

    # Row-tile size: cap block bytes; the grid (with a masked tail) does the rest.
    tm = (_MAX_BLOCK_BYTES // (lane * itemsize)) // sub * sub
    tm = max(sub, tm)
    if tm >= rows:
        tm = rows  # single block covering the full (possibly odd) row extent

    # Alias output onto input only when the caller promises x is dead after
    # this call; otherwise XLA would insert a defensive copy.
    alias = donate_input and not padded

    semantics = _row_axis_semantics(pl.cdiv(rows, tm))
    try:
        out2 = _tanh_pallas_2d(x2, tm, semantics, alias)
    except Exception:
        if semantics is pltpu.PARALLEL:
            raise
        # Conservative fallback if CORE_PARALLEL is rejected on this chip/driver.
        out2 = _tanh_pallas_2d(x2, tm, pltpu.PARALLEL, alias)

    if padded:
        out = out2.reshape(-1)[:n_total].reshape(x.shape)
    else:
        out = out2.reshape(x.shape)
    return out


if __name__ == "__main__":
    key = jax.random.PRNGKey(0)
    k1, k2, k3, k4 = jax.random.split(key, 4)

    # Small deterministic input consistent with the module (dim=1 exists so
    # the reference's torch.cat(dim=1) would be legal): batch=2, hidden=32.
    x_small = jax.random.normal(k1, (2, 32), dtype=jnp.float32)
    out_small = jax.block_until_ready(model_forward(x_small, force_pallas=True))
    assert out_small.shape == x_small.shape and out_small.dtype == x_small.dtype
    assert jnp.allclose(out_small, jnp.tanh(x_small), atol=1e-6, rtol=1e-6)

    # Lane-aligned trailing dim -> zero-copy 2D path (no pad / no slice).
    x_aligned = jax.random.normal(k2, (512, 384), dtype=jnp.float32)
    out_aligned = jax.block_until_ready(model_forward(x_aligned))
    assert out_aligned.shape == x_aligned.shape
    assert jnp.allclose(out_aligned, jnp.tanh(x_aligned), atol=1e-6, rtol=1e-6)

    # Non-aligned trailing dim -> flattened lane-dense path (no pad needed here).
    x_flat = jax.random.normal(k3, (512, 200), dtype=jnp.float32)
    out_flat = jax.block_until_ready(model_forward(x_flat, force_pallas=True))
    assert out_flat.shape == x_flat.shape
    assert jnp.allclose(out_flat, jnp.tanh(x_flat), atol=1e-6, rtol=1e-6)

    # Multi-block grid with a masked, non-sublane-multiple row tail.
    x_big = jax.random.normal(k4, (3001, 512), dtype=jnp.float32)
    out_big = jax.block_until_ready(model_forward(x_big))
    assert out_big.shape == x_big.shape
    assert jnp.allclose(out_big, jnp.tanh(x_big), atol=1e-6, rtol=1e-6)

    print("KERNEL_OK")
</pallas_src>

<mosaic_0001>
module attributes {stable_mosaic.version = 11 : i64} {
  func.func @_tanh_kernel(%arg0: i32, %arg1: memref<1x128xf32, #tpu.memory_space<vmem>>, %arg2: memref<1x128xf32, #tpu.memory_space<vmem>>) attributes {dimension_semantics = [#tpu.dimension_semantics<parallel>], iteration_bounds = array<i64: 1>, scalar_prefetch = 0 : i64, scratch_operands = 0 : i64, tpu.core_type = #tpu.core_type<tc>, window_params = [{transform_indices = @transform_0, window_bounds = array<i64: 1, 128>}, {transform_indices = @transform_1, window_bounds = array<i64: 1, 128>}]} {
    %c0 = arith.constant 0 : index
    %c0_0 = arith.constant 0 : index
    %0 = vector.load %arg1[%c0, %c0_0] : memref<1x128xf32, #tpu.memory_space<vmem>>, vector<1x128xf32>
    %1 = math.tanh %0 : vector<1x128xf32>
    %c0_1 = arith.constant 0 : index
    %c0_2 = arith.constant 0 : index
    %2 = vector.load %arg2[%c0_1, %c0_2] : memref<1x128xf32, #tpu.memory_space<vmem>>, vector<1x128xf32>
    tpu.vector_store %arg2[%c0_1, %c0_2], %1 {strides = array<i32>} : memref<1x128xf32, #tpu.memory_space<vmem>>, vector<1x128xf32>,
    return
  }
  func.func @transform_0(%arg0: i32) -> (i32, i32) {
    %c0_i32 = arith.constant 0 : i32
    %c0_i32_0 = arith.constant 0 : i32
    return %arg0, %c0_i32 : i32, i32
  }
  func.func @transform_1(%arg0: i32) -> (i32, i32) {
    %c0_i32 = arith.constant 0 : i32
    %c0_i32_0 = arith.constant 0 : i32
    return %arg0, %c0_i32 : i32, i32
  }
}

</mosaic_0001>

<bundles_post_ra>
// kernel: tpu_custom_call.1
= control target key start
LH: loop header
LB: loop body
LE: loop exit
PB: predicated region body
PF: predicated region fallthrough
CT: control target
= control target key end

     0   :  { %6 = vsyncpa [#allocation3], 0  ;;  %s127_s0 = inlined_call_operand.hbm [shape: f32[1,128], index: 0, kind: input, shape index: {}]   ;;  %s128_s1 = inlined_call_operand.hbm [shape: f32[1,128], index: 1, kind: output, shape index: {}]  }
   0x1   :  { %7 = vsyncpa [#allocation4], 0  ;;  %s91_s6 = smov [#allocation2]   ;;  %s43_s10 = scalar_lea.hbm %s127_s0, 16 }
   0x2   :  { %s14_s7 = sshll.u32 %s91_s6, 4  ;;  %p44_p0 = scmp.ne.s32.totalorder %s127_s0, %s43_s10  ;;  %s15_s7 = int_to_ptr.vmem [resolvable:$true] %s14_s7 }
   0x3   :  { %p47_p1 = scmp.lt.u32.totalorder %s43_s10, %s127_s0 }
   0x5   :  { %p49_p2 = pnand %p47_p1, %p44_p0 }
   0x7   :  { %52 = shalt.err (!%p49_p2)
}
   0x8   :  { %s53_s15 = scalar_lea.vmem %s15_s7, 16  ;;  %s57_s16 = scalar_lea.vmem %s15_s7, 32 }
   0x9   :  { %p54_p3 = scmp.ne.s32.totalorder %s15_s7, %s53_s15  ;;  %p58_p4 = scmp.lt.s32.totalorder %s15_s7, %s15_s7 }
   0xa   :  { %p59_p5 = scmp.lt.s32.totalorder %s57_s16, %s53_s15 }
   0xc   :  { %p60_p6 = por %p59_p5, %p58_p4 }
   0xe   :  { %p61_p7 = pnand %p60_p6, %p54_p3 }
  0x10   :  { %64 = shalt.err (!%p61_p7)
}
  0x11   :  { %17 = dma.hbm_to_vmem [thread:$0]  %s127_s0, 16, %s15_s7, [#allocation3]  }
  0x12   :  { %87 = dma.done.wait [#allocation3], 16  }
  0x13   :  { %88 = vsyncadd [#allocation3], 4294967280  ;;  %v21_v0 = vld [vmem:[#allocation2] sm:$0x1]  ;;  %s92_s19 = smov [#allocation5]  }
  0x14   :  { %41 = vtanh.f32 %v21_v0  ;;  %s30_s20 = sshll.u32 %s92_s19, 4  ;;  %s31_s20 = int_to_ptr.vmem [resolvable:$true] %s30_s20 }
  0x15   :  { %s65_s21 = scalar_lea.vmem %s31_s20, 16  ;;  %s69_s22 = scalar_lea.vmem %s31_s20, 32 }
  0x16   :  { %p66_p8 = scmp.ne.s32.totalorder %s31_s20, %s65_s21  ;;  %p70_p9 = scmp.lt.s32.totalorder %s31_s20, %s31_s20 }
  0x17   :  { %p71_p10 = scmp.lt.s32.totalorder %s69_s22, %s65_s21 }
  0x19   :  { %p72_p11 = por %p71_p10, %p70_p9 }
  0x1b   :  { %p73_p12 = pnand %p72_p11, %p66_p8 }
  0x1e   :  { %v42_v1 = vpop.eup %41 }
  0x1f   :  { %23 = vst [vmem:[#allocation5] sm:$0x1] %v42_v1 }
  0x20   :  { %76 = shalt.err (!%p73_p12)
}
  0x21   :  { %s77_s0 = scalar_lea.hbm %s128_s1, 16 }
  0x22   :  { %p78_p13 = scmp.ne.s32.totalorder %s128_s1, %s77_s0  ;;  %p81_p0 = scmp.lt.u32.totalorder %s77_s0, %s128_s1 }
  0x24   :  { %p83_p1 = pnand %p81_p0, %p78_p13 }
  0x26   :  { %86 = shalt.err (!%p83_p1)
}
  0x27   :  { %33 = dma.vmem_to_hbm [thread:$0]  %s31_s20, 16, %s128_s1, [#allocation4]  }
  0x28   :  { %89 = dma.done.wait [#allocation4], 16  }
  0x29   :  { %90 = vsyncadd [#allocation4], 4294967280 }
  0x2a   :  { %37 = vsyncpa [#allocation3], 1 }
  0x2b   :  { %38 = vsyncpa [#allocation4], 1 }

</bundles_post_ra>
